<compile_context>
chip_gen: v7x
topology: tpu7x:2x2x1
jax: 0.10.0
libtpu: 0.0.40
codegen_flags: <defaults>
</compile_context>

<pallas_src>
import functools

import jax
import jax.numpy as jnp
from jax.experimental import pallas as pl
from jax.experimental.pallas import tpu as pltpu


# ----------------------------------------------------------------------------
# Kernels
# ----------------------------------------------------------------------------

def _fc_attention(pooled, w1t, w2t, nb):
    """pooled: (2*Nb, C) f32 (avg rows stacked on max rows);
    w1t: (C, hidden); w2t: (hidden, C).  Returns sigmoid attention (Nb, C) f32."""
    h = jnp.dot(pooled, w1t, preferred_element_type=jnp.float32)   # (2*Nb, hidden)
    h = jnp.maximum(h, 0.0)                                        # ReLU
    a = jnp.dot(h, w2t, preferred_element_type=jnp.float32)        # (2*Nb, C)
    return jax.nn.sigmoid(a[:nb] + a[nb:])                         # (Nb, C)


def se_block_kernel(x_ref, w1t_ref, w2t_ref, o_ref):
    """Single fused pass over one (Nb, C, HW) batch block."""
    xb = x_ref[...]                                    # native dtype, no f32 copy
    nb, _, hw = xb.shape
    # AdaptiveAvgPool2d(1) / AdaptiveMaxPool2d(1) with f32 accumulation only.
    avg = jnp.sum(xb, axis=-1, dtype=jnp.float32) * (1.0 / hw)     # (Nb, C)
    mx = jnp.max(xb, axis=-1).astype(jnp.float32)                  # (Nb, C)
    pooled = jnp.concatenate([avg, mx], axis=0)                    # (2*Nb, C)
    att = _fc_attention(pooled,
                        w1t_ref[...].astype(jnp.float32),
                        w2t_ref[...].astype(jnp.float32), nb)      # (Nb, C) f32
    # Final scale in the input dtype (no f32 product block).
    o_ref[...] = (xb * att.astype(o_ref.dtype)[:, :, None]).astype(o_ref.dtype)


def se_pool_attn_kernel(x_ref, w1t_ref, w2t_ref, att_ref, sum_sc, max_sc, *, hw_total):
    """HW-tiled fallback, pass 1: accumulate sum/max over HW tiles, then run the
    fused FC + sigmoid at the last HW step and emit (Nb, C, 1) attention."""
    hw_i = pl.program_id(1)

    @pl.when(hw_i == 0)
    def _():
        sum_sc[...] = jnp.zeros_like(sum_sc)
        max_sc[...] = jnp.full_like(max_sc, -jnp.inf)

    xb = x_ref[...]                                                # (Nb, C, hw_tile)
    sum_sc[...] += jnp.sum(xb, axis=-1, dtype=jnp.float32)
    max_sc[...] = jnp.maximum(max_sc[...], jnp.max(xb, axis=-1).astype(jnp.float32))

    @pl.when(hw_i == pl.num_programs(1) - 1)
    def _():
        nb = sum_sc.shape[0]
        avg = sum_sc[...] * (1.0 / hw_total)
        pooled = jnp.concatenate([avg, max_sc[...]], axis=0)       # (2*Nb, C)
        att = _fc_attention(pooled,
                            w1t_ref[...].astype(jnp.float32),
                            w2t_ref[...].astype(jnp.float32), nb)  # (Nb, C) f32
        att_ref[...] = att[:, :, None]


def se_scale_kernel(x_ref, att_ref, o_ref):
    """HW-tiled fallback, pass 2: broadcast multiply x by attention."""
    o_ref[...] = (x_ref[...] * att_ref[...].astype(o_ref.dtype)).astype(o_ref.dtype)


# ----------------------------------------------------------------------------
# Wrapper / tiling policy
# ----------------------------------------------------------------------------

def _tpu_vmem_budget():
    """Returns (block_budget_bytes, vmem_limit_ceiling_bytes, is_v7x_like)."""
    try:
        vmem_cap = int(pltpu.get_tpu_info().vmem_capacity_bytes)
    except Exception:
        vmem_cap = 64 << 20          # conservative fallback: assume v7x-sized VMEM
    is_v7x_like = vmem_cap <= (96 << 20)   # v7x: 64 MiB/TC; v5e/v6e: 128 MiB
    block_budget = (10 << 20) if is_v7x_like else (24 << 20)
    vmem_ceiling = max(32 << 20, vmem_cap - (16 << 20))            # 48 / 112 MiB
    return block_budget, vmem_ceiling, is_v7x_like


def _pick_batch_tile(n, per_n_bytes, budget_bytes, *, split_two_cores):
    """Largest divisor of n whose block fits the byte budget.  Only on 2-TC
    (v7x-like) parts do we keep >= 2 grid steps when n >= 2."""
    nb_cap = max(1, min(n, budget_bytes // max(1, per_n_bytes)))
    if split_two_cores and n >= 2:
        nb_cap = max(1, min(nb_cap, n // 2))
    nb = int(nb_cap)
    while n % nb:
        nb -= 1
    return nb


def _pick_hw_tile(hw, c, elem_bytes, budget_bytes):
    """Largest multiple-of-128 divisor of hw whose (1, C, tile) block fits."""
    best = 0
    for t in range(128, hw + 1, 128):
        if hw % t == 0 and c * t * elem_bytes <= budget_bytes:
            best = t
    return best


def improved_se_block(x_nchw, w1, w2, *, block_budget_bytes=None):
    """x_nchw: (N, C, H, W); w1: (C//r, C); w2: (C, C//r) -- the bias-free 1x1
    conv weights of the PyTorch ImprovedSEBlock.  Returns
    x * sigmoid(fc(avg_pool(x)) + fc(max_pool(x)))."""
    N, C, H, W = x_nchw.shape
    HW = H * W
    x_flat = x_nchw.reshape(N, C, HW)

    # Pre-transpose weights once so both in-kernel dots are plain (M,K)x(K,N).
    w1t = jnp.transpose(w1)          # (C, hidden)
    w2t = jnp.transpose(w2)          # (hidden, C)
    hidden = w1.shape[0]

    elem_bytes = jnp.dtype(x_nchw.dtype).itemsize
    weight_bytes = (w1.size + w2.size) * jnp.dtype(w1.dtype).itemsize

    auto_budget, vmem_ceiling, is_v7x_like = _tpu_vmem_budget()
    block_budget = auto_budget if block_budget_bytes is None else int(block_budget_bytes)

    slab_bytes = C * HW * elem_bytes            # one batch element, flattened

    # Decide whether the HW-tiled two-pass fallback is needed / possible.
    hw_tile = 0
    if slab_bytes > block_budget and HW % 128 == 0:
        hw_tile = _pick_hw_tile(HW, C, elem_bytes, block_budget)
    use_tiled = 0 < hw_tile < HW

    if not use_tiled:
        # ------------------ single fused pass: grid over batch ------------------
        # (If the slab is oversized and un-tileable we still take this path;
        #  see the channel-tiling TODO above.)
        Nb = _pick_batch_tile(N, slab_bytes, block_budget,
                              split_two_cores=is_v7x_like)
        block_bytes = Nb * slab_bytes
        # double-buffered in + out blocks, resident weights, slack for temporaries
        vmem_needed = 4 * block_bytes + 2 * weight_bytes + (8 << 20)
        vmem_limit = int(min(max(vmem_needed, 32 << 20), vmem_ceiling))

        cost = pl.CostEstimate(
            flops=3 * N * C * HW + 8 * N * C * hidden,
            transcendentals=N * C,
            bytes_accessed=2 * N * C * HW * elem_bytes + weight_bytes,
        )
        out_flat = pl.pallas_call(
            se_block_kernel,
            out_shape=jax.ShapeDtypeStruct((N, C, HW), x_nchw.dtype),
            grid_spec=pltpu.PrefetchScalarGridSpec(
                num_scalar_prefetch=0,
                grid=(N // Nb,),
                in_specs=[
                    pl.BlockSpec((Nb, C, HW), lambda n: (n, 0, 0)),
                    pl.BlockSpec(w1t.shape, lambda n: (0, 0)),   # resident weights
                    pl.BlockSpec(w2t.shape, lambda n: (0, 0)),   # resident weights
                ],
                out_specs=pl.BlockSpec((Nb, C, HW), lambda n: (n, 0, 0)),
            ),
            compiler_params=pltpu.CompilerParams(
                dimension_semantics=("parallel",),
                vmem_limit_bytes=vmem_limit,
            ),
            cost_estimate=cost,
        )(x_flat, w1t, w2t)
        return out_flat.reshape(N, C, H, W)

    # ---------------- HW-tiled two-pass fallback for oversized slabs ----------------
    Nb = _pick_batch_tile(N, C * hw_tile * elem_bytes, block_budget,
                          split_two_cores=is_v7x_like)
    block_bytes = Nb * C * hw_tile * elem_bytes
    n_hw = HW // hw_tile
    grid = (N // Nb, n_hw)

    # Pass 1: pooled sum/max accumulation over HW tiles + fused FC at finalize.
    pool_vmem = int(min(max(2 * block_bytes + 2 * weight_bytes + (8 << 20), 32 << 20),
                        vmem_ceiling))
    att = pl.pallas_call(
        functools.partial(se_pool_attn_kernel, hw_total=HW),
        out_shape=jax.ShapeDtypeStruct((N, C, 1), jnp.float32),
        grid_spec=pltpu.PrefetchScalarGridSpec(
            num_scalar_prefetch=0,
            grid=grid,
            in_specs=[
                pl.BlockSpec((Nb, C, hw_tile), lambda n, h: (n, 0, h)),
                pl.BlockSpec(w1t.shape, lambda n, h: (0, 0)),
                pl.BlockSpec(w2t.shape, lambda n, h: (0, 0)),
            ],
            out_specs=pl.BlockSpec((Nb, C, 1), lambda n, h: (n, 0, 0)),
            scratch_shapes=[pltpu.VMEM((Nb, C), jnp.float32),   # running sum
                            pltpu.VMEM((Nb, C), jnp.float32)],  # running max
        ),
        compiler_params=pltpu.CompilerParams(
            dimension_semantics=("parallel", "arbitrary"),
            vmem_limit_bytes=pool_vmem,
        ),
        cost_estimate=pl.CostEstimate(
            flops=2 * N * C * HW + 8 * N * C * hidden,
            transcendentals=N * C,
            bytes_accessed=N * C * HW * elem_bytes + weight_bytes + N * C * 4,
        ),
    )(x_flat, w1t, w2t)

    # Pass 2: broadcast multiply (lane-dense HW-last blocks).
    scale_vmem = int(min(max(4 * block_bytes + (8 << 20), 32 << 20), vmem_ceiling))
    out_flat = pl.pallas_call(
        se_scale_kernel,
        out_shape=jax.ShapeDtypeStruct((N, C, HW), x_nchw.dtype),
        grid_spec=pltpu.PrefetchScalarGridSpec(
            num_scalar_prefetch=0,
            grid=grid,
            in_specs=[
                pl.BlockSpec((Nb, C, hw_tile), lambda n, h: (n, 0, h)),
                pl.BlockSpec((Nb, C, 1), lambda n, h: (n, 0, 0)),
            ],
            out_specs=pl.BlockSpec((Nb, C, hw_tile), lambda n, h: (n, 0, h)),
        ),
        compiler_params=pltpu.CompilerParams(
            dimension_semantics=("parallel", "parallel"),
            vmem_limit_bytes=scale_vmem,
        ),
        cost_estimate=pl.CostEstimate(
            flops=N * C * HW,
            transcendentals=0,
            bytes_accessed=2 * N * C * HW * elem_bytes + N * C * 4,
        ),
    )(x_flat, att)
    return out_flat.reshape(N, C, H, W)


# ----------------------------------------------------------------------------
# Test
# ----------------------------------------------------------------------------

if __name__ == "__main__":
    # Small shapes consistent with the module: ch=64, r=16 -> hidden=4.
    N, C, H, W = 2, 64, 16, 16
    r = 16
    hidden = C // r

    key = jax.random.PRNGKey(0)
    kx, k1, k2 = jax.random.split(key, 3)

    x = jax.random.normal(kx, (N, C, H, W), dtype=jnp.float32)
    # Deterministic synthetic weights for the two bias-free 1x1 convs.
    w1 = jax.random.normal(k1, (hidden, C), dtype=jnp.float32) * 0.1  # ch -> ch//r
    w2 = jax.random.normal(k2, (C, hidden), dtype=jnp.float32) * 0.1  # ch//r -> ch

    # Pure-JAX reference (same semantics as the PyTorch forward).
    avg_p = jnp.mean(x, axis=(2, 3))                 # (N, C)
    max_p = jnp.max(x, axis=(2, 3))                  # (N, C)

    def fc_ref(v):                                   # v: (N, C)
        h = jnp.maximum(jnp.einsum('hc,nc->nh', w1, v), 0.0)
        return jnp.einsum('ch,nh->nc', w2, h)

    att_ref = jax.nn.sigmoid(fc_ref(avg_p) + fc_ref(max_p))
    ref = x * att_ref[:, :, None, None]

    # 1) Default path: single fused pass (generation-aware budget).
    out = improved_se_block(x, w1, w2)
    jax.block_until_ready(out)
    assert jnp.allclose(out, ref, atol=1e-5, rtol=1e-5), "fused path mismatch"

    # 2) Force the HW-tiled two-pass fallback (as used for oversized feature
    #    maps on v7x) by shrinking the block budget; validates that path too.
    out_tiled = improved_se_block(x, w1, w2, block_budget_bytes=32 << 10)
    jax.block_until_ready(out_tiled)
    assert jnp.allclose(out_tiled, ref, atol=1e-5, rtol=1e-5), "tiled path mismatch"

    print("KERNEL_OK")
</pallas_src>

<mosaic_0001>
module attributes {stable_mosaic.version = 11 : i64} {
  func.func @se_block_kernel(%arg0: i32, %arg1: memref<1x64x256xf32, #tpu.memory_space<vmem>>, %arg2: memref<64x4xf32, #tpu.memory_space<vmem>>, %arg3: memref<4x64xf32, #tpu.memory_space<vmem>>, %arg4: memref<1x64x256xf32, #tpu.memory_space<vmem>>) attributes {dimension_semantics = [#tpu.dimension_semantics<parallel>], iteration_bounds = array<i64: 2>, scalar_prefetch = 0 : i64, scratch_operands = 0 : i64, tpu.core_type = #tpu.core_type<tc>, window_params = [{transform_indices = @transform_0, window_bounds = array<i64: 1, 64, 256>}, {pipeline_mode = #tpu.pipeline_mode<synchronous>, transform_indices = @transform_1, window_bounds = array<i64: 64, 4>}, {pipeline_mode = #tpu.pipeline_mode<synchronous>, transform_indices = @transform_2, window_bounds = array<i64: 4, 64>}, {transform_indices = @transform_3, window_bounds = array<i64: 1, 64, 256>}]} {
    %c0 = arith.constant 0 : index
    %c0_0 = arith.constant 0 : index
    %c0_1 = arith.constant 0 : index
    %0 = vector.load %arg1[%c0, %c0_0, %c0_1] : memref<1x64x256xf32, #tpu.memory_space<vmem>>, vector<1x64x256xf32>
    %cst = arith.constant dense<0.000000e+00> : vector<1x64xf32>
    %1 = vector.multi_reduction <add>, %0, %cst [2] : vector<1x64x256xf32> to vector<1x64xf32>
    %cst_2 = arith.constant 3.906250e-03 : f32
    %2 = vector.broadcast %cst_2 : f32 to vector<1x64xf32>
    %3 = arith.mulf %1, %2 : vector<1x64xf32>
    %cst_3 = arith.constant dense<0xFF800000> : vector<1x64xf32>
    %4 = vector.multi_reduction <maximumf>, %0, %cst_3 [2] : vector<1x64x256xf32> to vector<1x64xf32>
    %5 = tpu.concatenate %3, %4 in 0 : vector<1x64xf32>, vector<1x64xf32> -> vector<2x64xf32>
    %c0_4 = arith.constant 0 : index
    %c0_5 = arith.constant 0 : index
    %6 = vector.load %arg2[%c0_4, %c0_5] : memref<64x4xf32, #tpu.memory_space<vmem>>, vector<64x4xf32>
    %c0_6 = arith.constant 0 : index
    %c0_7 = arith.constant 0 : index
    %7 = vector.load %arg3[%c0_6, %c0_7] : memref<4x64xf32, #tpu.memory_space<vmem>>, vector<4x64xf32>
    %cst_8 = arith.constant dense<0.000000e+00> : vector<2x4xf32>
    %8 = tpu.matmul %5, %6, %cst_8 {dimension_numbers = #tpu.dot_dimension_numbers<[1], [0], [0], [1], [0, 0, 1, 1], [], []>} : vector<2x64xf32>, vector<64x4xf32>, vector<2x4xf32> -> vector<2x4xf32>
    %cst_9 = arith.constant 0.000000e+00 : f32
    %9 = vector.broadcast %cst_9 : f32 to vector<2x4xf32>
    %10 = arith.maximumf %8, %9 : vector<2x4xf32>
    %cst_10 = arith.constant dense<0.000000e+00> : vector<2x64xf32>
    %11 = tpu.matmul %10, %7, %cst_10 {dimension_numbers = #tpu.dot_dimension_numbers<[1], [0], [0], [1], [0, 0, 1, 1], [], []>} : vector<2x4xf32>, vector<4x64xf32>, vector<2x64xf32> -> vector<2x64xf32>
    %12 = vector.extract_strided_slice %11 {offsets = [0, 0], sizes = [1, 64], strides = [1, 1]} : vector<2x64xf32> to vector<1x64xf32>
    %13 = vector.extract_strided_slice %11 {offsets = [1, 0], sizes = [1, 64], strides = [1, 1]} : vector<2x64xf32> to vector<1x64xf32>
    %14 = arith.addf %12, %13 : vector<1x64xf32>
    %15 = arith.negf %14 : vector<1x64xf32>
    %16 = math.exp %15 : vector<1x64xf32>
    %cst_11 = arith.constant 1.000000e+00 : f32
    %17 = vector.broadcast %cst_11 : f32 to vector<1x64xf32>
    %18 = arith.addf %17, %16 : vector<1x64xf32>
    %19 = arith.divf %17, %18 : vector<1x64xf32>
    %20 = vector.shape_cast %19 : vector<1x64xf32> to vector<1x64x1xf32>
    %21 = vector.broadcast %20 : vector<1x64x1xf32> to vector<1x64x256xf32>
    %22 = arith.mulf %0, %21 : vector<1x64x256xf32>
    %c0_12 = arith.constant 0 : index
    %c0_13 = arith.constant 0 : index
    %c0_14 = arith.constant 0 : index
    %23 = vector.load %arg4[%c0_12, %c0_13, %c0_14] : memref<1x64x256xf32, #tpu.memory_space<vmem>>, vector<1x64x256xf32>
    tpu.vector_store %arg4[%c0_12, %c0_13, %c0_14], %22 {strides = array<i32>} : memref<1x64x256xf32, #tpu.memory_space<vmem>>, vector<1x64x256xf32>,
    return
  }
  func.func @transform_0(%arg0: i32) -> (i32, i32, i32) {
    %c0_i32 = arith.constant 0 : i32
    %c0_i32_0 = arith.constant 0 : i32
    %c0_i32_1 = arith.constant 0 : i32
    return %arg0, %c0_i32, %c0_i32_0 : i32, i32, i32
  }
  func.func @transform_1(%arg0: i32) -> (i32, i32) {
    %c0_i32 = arith.constant 0 : i32
    %c0_i32_0 = arith.constant 0 : i32
    %c0_i32_1 = arith.constant 0 : i32
    return %c0_i32, %c0_i32_0 : i32, i32
  }
  func.func @transform_2(%arg0: i32) -> (i32, i32) {
    %c0_i32 = arith.constant 0 : i32
    %c0_i32_0 = arith.constant 0 : i32
    %c0_i32_1 = arith.constant 0 : i32
    return %c0_i32, %c0_i32_0 : i32, i32
  }
  func.func @transform_3(%arg0: i32) -> (i32, i32, i32) {
    %c0_i32 = arith.constant 0 : i32
    %c0_i32_0 = arith.constant 0 : i32
    %c0_i32_1 = arith.constant 0 : i32
    return %arg0, %c0_i32, %c0_i32_0 : i32, i32, i32
  }
}

</mosaic_0001>

<bundles_post_ra>
// kernel: tpu_custom_call.1
= control target key start
LH: loop header
LB: loop body
LE: loop exit
PB: predicated region body
PF: predicated region fallthrough
CT: control target
= control target key end

     0   :  { %8 = vsyncpa [#allocation3], 0  ;;  %s1281_s0 = inlined_call_operand.hbm [shape: f32[2,64,256], index: 0, kind: input, shape index: {}]   ;;  %s1282_s1 = inlined_call_operand.vmem [shape: f32[64,4], index: 1, kind: input, shape index: {}]   ;;  %s1283_s2 = inlined_call_operand.vmem [shape: f32[4,64], index: 2, kind: input, shape index: {}]   ;;  %s1284_s3 = inlined_call_operand.hbm [shape: f32[2,64,256], index: 3, kind: output, shape index: {}]  }
   0x1   :  { %10 = vsyncpa [#allocation3 + $0x1], 0 }
   0x2   :  { %11 = vsyncpa [#allocation4], 0 }
   0x3   :  { %13 = vsyncpa [#allocation4 + $0x1], 0  ;;  %s952_s12 = smov 0   ;;  %s954_s13 = smov 0  }
   0x4   :  { %s956_s14 = smov 0   ;;  %s958_s15 = smov 0  }
   0x5 LB: > { %s973_s16 = sadd.s32 4294967295, %s921_s15   ;;  %s701_s17 = sadd.s32 4294967294, %s921_s15   ;;  %s921_s15 = sphi %s958_s15, %s1297_s15   ;;  %s917_s14 = sphi %s956_s14, %s1296_s14   ;;  %s913_s13 = sphi %s954_s13, %s1295_s13   ;;  %s909_s12 = sphi %s952_s12, %s1294_s12  }
   0x6   : > { %s977_s18 = sadd.s32 1, %s921_s15   ;;  %s26_s19 = sadd.s32 1, %s917_s14 }
   0x7   : > { %s23_s20 = ssub.s32 %s921_s15, %s977_s18  ;;  %p33_p0 = scmp.ne.s32.totalorder %s917_s14, %s913_s13 }
   0x8   : > { %p24_p1 = scmp.eq.s32.totalorder %s23_s20, 0  ;;  %p34_p2 = scmp.eq.s32.totalorder %s921_s15, 0 }
   0x9   : > { %p39_p3 = scmp.ne.s32.totalorder %s913_s13, %s909_s12  ;;  %p40_p4 = scmp.eq.s32.totalorder %s973_s16, 0 }
   0xa   : > { %s989_s21 = scalar_select %p24_p1, %s917_s14, %s26_s19  }
   0xb   : > { %p991_p5 = por %p34_p2, %p33_p0  ;;  %p995_p6 = por %p40_p4, %p39_p3 }
   0xc   : > { %p105_p7 = scmp.eq.s32.totalorder %s973_s16, 1  ;;  %p111_p8 = scmp.eq.s32.totalorder %s701_s17, 1 }
   0xd   : > { %p780_p10 = scmp.lt.s32.totalorder %s921_s15, 2  ;;  %s137_s26 = sand.u32 1, %s917_s14  }
   0xe   : > { %p1002_p11 = por %p105_p7, %p33_p0  ;;  %p1006_p12 = por %p111_p8, %p39_p3 }
   0xf   : > { %s719_s27 = sshll.u32 %s921_s15, 11  ;;  %s704_s28 = sshll.u32 %s137_s26, 7 }
  0x10   : > { %s1288_s24 = scalar_select %p1002_p11, 1, 0 }
  0x11   : > { %s1289_s25 = scalar_select %p1006_p12, 1, 0 }
  0x12   : > { %s1015_s4 = scalar_lea.hbm %s1281_s0, %s719_s27  ;;  %s141_s5 = scalar_lea.vmem [#allocation2], %s704_s28 }
  0x13   : > { %s148_s6 = sshll.u32 %s141_s5, 4  ;;  %p1019_p13 = pnand %p780_p10, %p991_p5  ;;  %s1023_s6 = int_to_ptr.vmem [resolvable:$true] %s148_s6 }
  0x14   : > { %s1025_s8 = scalar_lea.sflag [#allocation3], %s137_s26  ;;  %s825_s9 = scalar_lea.hbm %s1015_s4, 2048 }
  0x15   : > { %p826_p0 = scmp.ne.s32.totalorder %s1015_s4, %s825_s9  ;;  %p827_p1 = pneg %p1019_p13 }
  0x16   : > { %s830_s17 = scalar_lea.hbm %s1281_s0, 4096  ;;  %p831_p4 = scmp.lt.u32.totalorder %s1015_s4, %s1281_s0 }
  0x17   : > { %p828_p2 = pnand %p827_p1, %p826_p0  ;;  %p832_p5 = scmp.lt.u32.totalorder %s830_s17, %s825_s9 }
  0x18   : > { %p834_p8 = scmp.lt.u32.totalorder %s825_s9, %s1015_s4 }
  0x19   : > { %p829_p3 = pneg %p828_p2  ;;  %p833_p7 = por %p832_p5, %p831_p4 }
  0x1b   : > { %p835_p10 = por %p834_p8, %p833_p7 }
  0x1d   : > { %p836_p9 = pnand %p835_p10, %p829_p3 }
  0x1f   : > { %839 = shalt.err (!%p836_p9)
}
  0x20   : > { %s840_s22 = scalar_lea.vmem %s1023_s6, 2048  ;;  %s923_s26 = smov [#allocation2]  }
  0x21   : > { %p841_p0 = scmp.ne.s32.totalorder %s1023_s6, %s840_s22  ;;  %s845_s27 = sshll.u32 %s923_s26, 4  ;;  %s846_s27 = int_to_ptr.vmem [resolvable:$false] %s845_s27 }
  0x22   : > { %s847_s28 = scalar_lea.vmem %s846_s27, 4096  ;;  %p848_p11 = scmp.lt.s32.totalorder %s1023_s6, %s846_s27 }
  0x23   : > { %p843_p2 = pnand %p841_p0, %p827_p1  ;;  %p849_p4 = scmp.lt.s32.totalorder %s847_s28, %s840_s22 }
  0x25   : > { %p844_p12 = pneg %p843_p2  ;;  %p850_p5 = por %p849_p4, %p848_p11 }
  0x27   : > { %p851_p7 = pnand %p850_p5, %p844_p12 }
  0x29   : > { %854 = shalt.err (!%p851_p7)
}
  0x2a   : > { %s924_s29 = smov 256   ;;  %s925_s30 = smov 16  }
  0x2b   : > { %775 = dma.hbm_to_vmem [thread:$0]  (!%p1019_p13), %s1015_s4, 2048, %s1023_s6, %s1025_s8, %s924_s29, %s924_s29, %s925_s30  }
  0x2c   : > { %p707_p9 = scmp.ge.s32.totalorder %s921_s15, 1  ;;  %p156_p1 = scmp.lt.s32.totalorder %s921_s15, 3 }
  0x2e   : > { %p157_p3 = pnand %p707_p9, %p156_p1 }
  0x2f   : > { %s1056_s5 = sand.u32 (!%p157_p3), 1, %s913_s13  }
  0x30   : > { %160 = sbr.rel (%p157_p3) target bundleno = 841 (0x349), region = 32  ;;  %s708_s9 = sshll.u32 (!%p157_p3), %s1056_s5, 7 }
  0x31   : > { %s163_s10 = scalar_lea.sflag (!%p157_p3), [#allocation3], %s1056_s5  ;;  %s1062_s11 = scalar_lea.vmem (!%p157_p3), [#allocation2], %s708_s9 }
  0x37   : > { %900 = dma.done.wait (%p995_p6), %s163_s10, 2048  }
  0x38   : > { %902 = vsyncadd (%p995_p6), %s163_s10, 4294965248  ;;  %v1069_v0 = vld [vmem:[%s1062_s11 + $0x20] sm:$0xff]  ;;  %v1072_v1 = vld [vmem:[%s1062_s11 + $0x28] sm:$0xff]  ;;  %v926_v35 = vmov 0.0|0.0   ;;  %vm927_vm0 = vmmov 0   ;;  %v928_v45 = vmov 0.0   ;;  %v269_v49 = vlaneseq }
  0x39   : > { %v1075_v2 = vld [vmem:[%s1062_s11] sm:$0xff]  ;;  %v211_v3 = vadd.f32 %v1072_v1, %v1069_v0  ;;  %v1080_v4 = vld [vmem:[%s1062_s11 + $0x8] sm:$0xff]  ;;  %v1083_v5 = vld [vmem:[%s1062_s11 + $0x30] sm:$0xff]  ;;  %v243_v16 = vmax.f32 %v1069_v0, %v1072_v1  ;;  %756 = vmatprep.subr.bf16.mxu0 %v926_v35  ;;  %748 = vmatprep.mubr.msk.f32.mxu0 %vm927_vm0, %v928_v45  ;;  %vm280_vm1 = vcmask 130112   ;;  %vm287_vm2 = vcmask 195712   ;;  %s1200_s6 = scalar_lea.vmem [#allocation5], %s708_s9 }
  0x3a   : > { %v1086_v6 = vld [vmem:[%s1062_s11 + $0x38] sm:$0xff]  ;;  %v205_v7 = vadd.f32 %v1080_v4, %v1075_v2  ;;  %v1091_v8 = vld [vmem:[%s1062_s11 + $0x10] sm:$0xff]  ;;  %v237_v13 = vmax.f32 %v1075_v2, %v1080_v4  ;;  %v1105_v14 = vld [vmem:[%s1062_s11 + $0x40] sm:$0xff]  ;;  %751 = vmatprep.subr.mxu1 %v928_v45  ;;  %753 = vmatprep.mubr.msk.f32.mxu1 %vm927_vm0, %v928_v45  ;;  %v270_v52 = vand.u32 127, %v269_v49  ;;  %v1172_v56 = vshrl.u32 %v269_v49, 7  ;;  %s720_s9 = sshll.u32 %s973_s16, 11 }
  0x3b   : > { %v1094_v9 = vld [vmem:[%s1062_s11 + $0x18] sm:$0xff]  ;;  %212 = vadd.xlane.f32.xlu1 %v211_v3  ;;  %v214_v10 = vadd.f32 %v1086_v6, %v1083_v5  ;;  %v1108_v15 = vld [vmem:[%s1062_s11 + $0x48] sm:$0xff]  ;;  %v1115_v18 = vld [vmem:[%s1062_s11 + $0x50] sm:$0xff]  ;;  %v246_v20 = vmax.f32 %v1083_v5, %v1086_v6  ;;  %vm294_vm3 = vcmask 261312   ;;  %vm301_vm4 = vcmask 326912   ;;  %s628_s7 = sshll.u32 %s1200_s6, 4  ;;  %s1231_s19 = scalar_lea.hbm %s1284_s3, %s720_s9  ;;  %s1233_s7 = int_to_ptr.vmem [resolvable:$true] %s628_s7 }
  0x3c   : > { %206 = vadd.xlane.f32.xlu0 %v205_v7  ;;  %v208_v11 = vadd.f32 %v1094_v9, %v1091_v8  ;;  %v240_v12 = vmax.f32 %v1091_v8, %v1094_v9  ;;  %v217_v17 = vadd.f32 %v1108_v15, %v1105_v14  ;;  %v1118_v19 = vld [vmem:[%s1062_s11 + $0x58] sm:$0xff]  ;;  %v1125_v22 = vld [vmem:[%s1062_s11 + $0x60] sm:$0xff]  ;;  %v1128_v23 = vld [vmem:[%s1062_s11 + $0x68] sm:$0xff]  ;;  %v249_v24 = vmax.f32 %v1105_v14, %v1108_v15  ;;  %s615_s16 = scalar_lea.sflag [#allocation4], %s1056_s5  ;;  %s855_s20 = scalar_lea.vmem %s1233_s7, 2048 }
  0x3d   : > { %v220_v21 = vadd.f32 %v1118_v19, %v1115_v18  ;;  %v223_v25 = vadd.f32 %v1128_v23, %v1125_v22  ;;  %v1135_v26 = vld [vmem:[%s1062_s11 + $0x70] sm:$0xff]  ;;  %v1138_v27 = vld [vmem:[%s1062_s11 + $0x78] sm:$0xff]  ;;  %v252_v28 = vmax.f32 %v1115_v18, %v1118_v19  ;;  %v255_v31 = vmax.f32 %v1125_v22, %v1128_v23  ;;  %v375_v32 = vld [vmem:[%s1282_s1] sm:$0xff]  ;;  %p856_p6 = scmp.ne.s32.totalorder %s1233_s7, %s855_s20  ;;  %p1291_p11 = scmp.ne.s32.totalorder %s1288_s24, 0 }
  0x3e   : > { %v226_v29 = vadd.f32 %v1138_v27, %v1135_v26  ;;  %v258_v30 = vmax.f32 %v1135_v26, %v1138_v27  ;;  %v376_v33 = vld [vmem:[%s1282_s1 + $0x8] sm:$0xff]  ;;  %v377_v36 = vld [vmem:[%s1282_s1 + $0x10] sm:$0xff]  ;;  %v378_v37 = vld [vmem:[%s1282_s1 + $0x18] sm:$0xff]  ;;  %v275_v54 = vadd.s32 4294967288, %v270_v52  ;;  %v282_v60 = vadd.s32 4294967280, %v270_v52  ;;  %s929_s22 = smov [#allocation5]  }
  0x3f   : > { %215 = vadd.xlane.f32.xlu1 %v214_v10  ;;  %v757_v34 = vpack.c.bf16 %v376_v33, %v375_v32  ;;  %v760_v38 = vpack.c.bf16 %v378_v37, %v377_v36  ;;  %v379_v39 = vld [vmem:[%s1282_s1 + $0x20] sm:$0xff]  ;;  %v380_v40 = vld [vmem:[%s1282_s1 + $0x28] sm:$0xff]  ;;  %v381_v42 = vld [vmem:[%s1282_s1 + $0x30] sm:$0xff]  ;;  %v273_v62 = vsub.s32 %v270_v52, %v1172_v56  ;;  %v289_v3 = vadd.s32 4294967272, %v270_v52  ;;  %p857_p12 = pnand %p856_p6, %p1291_p11  ;;  %s859_s26 = sshll.u32 %s929_s22, 4  ;;  %s860_s26 = int_to_ptr.vmem [resolvable:$false] %s859_s26 }
  0x40   : > { %209 = vadd.xlane.f32.xlu0 %v208_v11  ;;  %v763_v41 = vpack.c.bf16 %v380_v40, %v379_v39  ;;  %v382_v43 = vld [vmem:[%s1282_s1 + $0x38] sm:$0xff]  ;;  %v278_v58 = vsub.s32 %v275_v54, %v1172_v56  ;;  %v296_v10 = vadd.s32 4294967264, %v270_v52  ;;  %v303_v11 = vadd.s32 4294967256, %v270_v52  ;;  %s861_s27 = scalar_lea.vmem %s860_s26, 4096  ;;  %p862_p8 = scmp.lt.s32.totalorder %s1233_s7, %s860_s26 }
  0x41   : > { %758 = vmatpush3.bf16.msra.mxu0 %v757_v34  ;;  %v766_v44 = vpack.c.bf16 %v382_v43, %v381_v42  ;;  %vm308_vm5 = vcmask 392512   ;;  %vm315_vm6 = vcmask 458112   ;;  %vm322_vm7 = vcmask 523712   ;;  %p858_p13 = pneg %p857_p12  ;;  %p863_p10 = scmp.lt.s32.totalorder %s861_s27, %s855_s20 }
  0x42   : > { %759 = vmatprep.subr.bf16.mxu0 %v926_v35  ;;  %v306_v32 = vsub.s32 %v303_v11, %v1172_v56  ;;  %vm373_vm8 = vcmask 1040384   ;;  %vm384_vm9 = vcmask 523264   ;;  %vm463_vm10 = vcmask 1043456  }
  0x43   : > { %241 = vmax.xlane.f32.xlu1 %v240_v12  ;;  %vm459_vm11 = vcmask 31744   ;;  %p864_p0 = por %p863_p10, %p862_p8 }
  0x44   : > { %238 = vmax.xlane.f32.xlu0 %v237_v13  ;;  %v285_v13 = vsub.s32 %v282_v60, %v1172_v56 }
  0x45   : > { %761 = vmatpush3.bf16.msra.mxu0 %v760_v38  ;;  %p865_p2 = pnand %p864_p0, %p858_p13 }
  0x46   : > { %762 = vmatprep.subr.bf16.mxu0 %v926_v35 }
  0x47   : > { %244 = vmax.xlane.f32.xlu1 %v243_v16 }
  0x48   : > { %218 = vadd.xlane.f32.xlu0 %v217_v17 }
  0x49   : > { %764 = vmatpush3.bf16.msra.mxu0 %v763_v41 }
  0x4a   : > { %765 = vmatprep.subr.bf16.mxu0 %v926_v35 }
  0x4b   : > { %247 = vmax.xlane.f32.xlu1 %v246_v20  ;;  %v310_v20 = vadd.s32 4294967248, %v270_v52 }
  0x4c   : > { %221 = vadd.xlane.f32.xlu0 %v220_v21 }
  0x4d   : > { %767 = vmatpush3.bf16.msra.mxu0 %v766_v44  ;;  %v313_v39 = vsub.s32 %v310_v20, %v1172_v56  ;;  %v383_v20 = vld [vmem:[%s1283_s2] sm:$0xf] }
  0x4e   : > { %752 = vmatpush3.msk.msra.mxu1 %vm463_vm10, %v383_v20 }
  0x4f   : > { %250 = vmax.xlane.f32.xlu1 %v249_v24  ;;  %v292_v24 = vsub.s32 %v289_v3, %v1172_v56 }
  0x50   : > { %224 = vadd.xlane.f32.xlu0 %v223_v25 }
  0x53   : > { %253 = vmax.xlane.f32.xlu1 %v252_v28 }
  0x54   : > { %227 = vadd.xlane.f32.xlu0 %v226_v29  ;;  %v317_v29 = vadd.s32 4294967240, %v270_v52 }
  0x56   : > { %v320_v44 = vsub.s32 %v317_v29, %v1172_v56 }
  0x57   : > { %259 = vmax.xlane.f32.xlu1 %v258_v30  ;;  %v299_v30 = vsub.s32 %v296_v10, %v1172_v56 }
  0x58   : > { %256 = vmax.xlane.f32.xlu0 %v255_v31 }
  0xc8   : > { %v213_v46 = vpop.xlane.xlu1 %212 }
  0xc9   : > { %v207_v47 = vpop.xlane.xlu0 %206  ;;  %v231_v16 = vmul.f32 0.00390625, %v213_v46 }
  0xca   : > { %v229_v63 = vmul.f32 0.00390625, %v207_v47 }
  0xcb   : > { %v286_v37 = vrot.slane %v231_v16, %v285_v13 }
  0xcc   : > { %v216_v48 = vpop.xlane.xlu1 %215  ;;  %v274_v21 = vrot.slane %v229_v63, %v273_v62 }
  0xcd   : > { %v210_v50 = vpop.xlane.xlu0 %209  ;;  %v232_v25 = vmul.f32 0.00390625, %v216_v48 }
  0xce   : > { %v230_v59 = vmul.f32 0.00390625, %v210_v50 }
  0xcf   : > { %v293_v42 = vrot.slane %v232_v25, %v292_v24 }
  0xd0   : > { %v242_v51 = vpop.xlane.xlu1 %241  ;;  %v279_v12 = vrot.slane %v230_v59, %v278_v58 }
  0xd1   : > { %v239_v53 = vpop.xlane.xlu0 %238  ;;  %v340_v34 = vrot.slane %v242_v51, %v278_v58 }
  0xd2   : > { %v281_v33 = vsel %vm280_vm1, %v279_v12, %v274_v21  ;;  %v336_v35 = vrot.slane %v239_v53, %v273_v62 }
  0xd3   : > { %v288_v46 = vsel %vm287_vm2, %v286_v37, %v281_v33 }
  0xd4   : > { %v245_v55 = vpop.xlane.xlu1 %244  ;;  %v341_v50 = vsel %vm280_vm1, %v340_v34, %v336_v35  ;;  %v549_v35 = vsub.s32 0, %v1172_v56 }
  0xd5   : > { %v219_v57 = vpop.xlane.xlu0 %218  ;;  %v345_v38 = vrot.slane %v245_v55, %v285_v13 }
  0xd6   : > { %v233_v31 = vmul.f32 0.00390625, %v219_v57  ;;  %v295_v57 = vsel %vm294_vm3, %v293_v42, %v288_v46 }
  0xd7   : > { %v346_v53 = vsel %vm287_vm2, %v345_v38, %v341_v50 }
  0xd8   : > { %v248_v61 = vpop.xlane.xlu1 %247  ;;  %v300_v47 = vrot.slane %v233_v31, %v299_v30 }
  0xd9   : > { %v222_v7 = vpop.xlane.xlu0 %221  ;;  %v350_v43 = vrot.slane %v248_v61, %v292_v24 }
  0xda   : > { %v234_v36 = vmul.f32 0.00390625, %v222_v7  ;;  %v302_v62 = vsel %vm301_vm4, %v300_v47, %v295_v57 }
  0xdb   : > { %v351_v58 = vsel %vm294_vm3, %v350_v43, %v346_v53 }
  0xdc   : > { %v251_v17 = vpop.xlane.xlu1 %250  ;;  %v307_v51 = vrot.slane %v234_v36, %v306_v32 }
  0xdd   : > { %v225_v28 = vpop.xlane.xlu0 %224  ;;  %v355_v48 = vrot.slane %v251_v17, %v299_v30 }
  0xde   : > { %v235_v40 = vmul.f32 0.00390625, %v225_v28  ;;  %v309_v7 = vsel %vm308_vm5, %v307_v51, %v302_v62 }
  0xdf   : > { %v356_v63 = vsel %vm301_vm4, %v355_v48, %v351_v58 }
  0xe0   : > { %v254_v41 = vpop.xlane.xlu1 %253  ;;  %v314_v54 = vrot.slane %v235_v40, %v313_v39 }
  0xe1   : > { %v228_v45 = vpop.xlane.xlu0 %227  ;;  %v360_v52 = vrot.slane %v254_v41, %v306_v32 }
  0xe2   : > { %v236_v49 = vmul.f32 0.00390625, %v228_v45  ;;  %v316_v11 = vsel %vm315_vm6, %v314_v54, %v309_v7 }
  0xe3   : > { %v361_v10 = vsel %vm308_vm5, %v360_v52, %v356_v63 }
  0xe4   : > { %v260_v55 = vpop.xlane.xlu1 %259  ;;  %v321_v59 = vrot.slane %v236_v49, %v320_v44 }
  0xe5   : > { %v257_v60 = vpop.xlane.xlu0 %256  ;;  %v370_v61 = vrot.slane %v260_v55, %v320_v44 }
  0xe6   : > { %v365_v3 = vrot.slane %v257_v60, %v313_v39  ;;  %v323_v16 = vsel %vm322_vm7, %v321_v59, %v316_v11 }
  0xe8   : > { %v366_v12 = vsel %vm315_vm6, %v365_v3, %v361_v10 }
  0xe9   : > { %v371_v13 = vsel %vm322_vm7, %v370_v61, %v366_v12 }
  0xea   : > { %v374_v17 = vsel %vm373_vm8, %v323_v16, %v371_v13 }
  0xeb   : > { %749 = vmatmul.mubr.msk.f32.vlgmr.msra.gmra.mrb[0].mxu0 %vm384_vm9, %v374_v17 }
 0x1be   : > { %v454_v21 = vpop.f32.mrb[0].mxu0 }
 0x1bf   : > { %v458_v24 = vmax.f32 %v454_v21, 0.0  ;;  %v750_v25 = vpop.f32.mrb[1].mxu0 }
 0x1c1   : > { %754 = vmatmul.mubr.msk.f32.vlgmr.msra.gmra.mrb[0].mxu1 %vm459_vm11, %v458_v24 }
 0x294   : > { %v533_v28 = vpop.f32.mrb[0].mxu1 }
 0x295   : > { %v538_v29 = vrot.slane %v533_v28, 1  ;;  %v755_v30 = vpop.f32.mrb[1].mxu1 }
 0x297   : > { %v540_v31 = vadd.f32 %v538_v29, %v533_v28 }
 0x299   : > { %v713_v32 = vmul.f32 -1.442695, %v540_v31 }
 0x29b   : > { %821 = vpow2.f32 %v713_v32 }
 0x2a5   : > { %v822_v33 = vpop.eup %821 }
 0x2a6   : > { %v544_v34 = vadd.f32 1.0, %v822_v33 }
 0x2a8   : > { %823 = vrcp.f32 %v544_v34 }
 0x2b2   : > { %v824_v36 = vpop.eup %823 }
 0x2b3   : > { %v550_v37 = vrot.slane %v824_v36, %v549_v35 }
 0x2b5   : > { %556 = vbcast.lane.b32.xlu1 %v550_v37, 264  ;;  %552 = vbcast.lane.b32.xlu0 %v550_v37, 256 }
 0x2b9   : > { %560 = vbcast.lane.b32.xlu1 %v550_v37, 272  ;;  %568 = vbcast.lane.b32.xlu0 %v550_v37, 288 }
 0x2bd   : > { %564 = vbcast.lane.b32.xlu1 %v550_v37, 280  ;;  %576 = vbcast.lane.b32.xlu0 %v550_v37, 304 }
 0x2c1   : > { %572 = vbcast.lane.b32.xlu1 %v550_v37, 296 }
 0x2c5   : > { %580 = vbcast.lane.b32.xlu1 %v550_v37, 312 }
 0x327   : > { %v557_v38 = vpop.permute.xlu1 %556  ;;  %v553_v39 = vpop.permute.xlu0 %552 }
 0x328   : > { %v584_v40 = vmul.f32 %v557_v38, %v1091_v8  ;;  %v585_v41 = vmul.f32 %v557_v38, %v1094_v9  ;;  %v582_v42 = vmul.f32 %v553_v39, %v1075_v2  ;;  %v583_v56 = vmul.f32 %v553_v39, %v1080_v4 }
 0x32a   : > { %600 = vst [vmem:[%s1200_s6 + $0x10] sm:$0xff] %v584_v40  ;;  %601 = vst [vmem:[%s1200_s6 + $0x18] sm:$0xff] %v585_v41 }
 0x32b   : > { %598 = vst [vmem:[%s1200_s6] sm:$0xff] %v582_v42  ;;  %599 = vst [vmem:[%s1200_s6 + $0x8] sm:$0xff] %v583_v56  ;;  %v561_v8 = vpop.permute.xlu1 %560  ;;  %v569_v2 = vpop.permute.xlu0 %568 }
 0x32c   : > { %v586_v4 = vmul.f32 %v561_v8, %v1069_v0  ;;  %v587_v9 = vmul.f32 %v561_v8, %v1072_v1  ;;  %v590_v43 = vmul.f32 %v569_v2, %v1105_v14  ;;  %v591_v44 = vmul.f32 %v569_v2, %v1108_v15 }
 0x32e   : > { %602 = vst [vmem:[%s1200_s6 + $0x20] sm:$0xff] %v586_v4  ;;  %603 = vst [vmem:[%s1200_s6 + $0x28] sm:$0xff] %v587_v9 }
 0x32f   : > { %606 = vst [vmem:[%s1200_s6 + $0x40] sm:$0xff] %v590_v43  ;;  %607 = vst [vmem:[%s1200_s6 + $0x48] sm:$0xff] %v591_v44  ;;  %v565_v45 = vpop.permute.xlu1 %564  ;;  %v577_v46 = vpop.permute.xlu0 %576 }
 0x330   : > { %v588_v0 = vmul.f32 %v565_v45, %v1083_v5  ;;  %v589_v47 = vmul.f32 %v565_v45, %v1086_v6  ;;  %v594_v1 = vmul.f32 %v577_v46, %v1125_v22  ;;  %v595_v14 = vmul.f32 %v577_v46, %v1128_v23 }
 0x332   : > { %604 = vst [vmem:[%s1200_s6 + $0x30] sm:$0xff] %v588_v0  ;;  %605 = vst [vmem:[%s1200_s6 + $0x38] sm:$0xff] %v589_v47 }
 0x333   : > { %610 = vst [vmem:[%s1200_s6 + $0x60] sm:$0xff] %v594_v1  ;;  %611 = vst [vmem:[%s1200_s6 + $0x68] sm:$0xff] %v595_v14  ;;  %v573_v15 = vpop.permute.xlu1 %572 }
 0x334   : > { %v592_v48 = vmul.f32 %v573_v15, %v1115_v18  ;;  %v593_v49 = vmul.f32 %v573_v15, %v1118_v19 }
 0x336   : > { %608 = vst [vmem:[%s1200_s6 + $0x50] sm:$0xff] %v592_v48  ;;  %609 = vst [vmem:[%s1200_s6 + $0x58] sm:$0xff] %v593_v49 }
 0x337   : > { %v581_v5 = vpop.permute.xlu1 %580 }
 0x338   : > { %v596_v6 = vmul.f32 %v581_v5, %v1135_v26  ;;  %v597_v18 = vmul.f32 %v581_v5, %v1138_v27 }
 0x33a   : > { %612 = vst [vmem:[%s1200_s6 + $0x70] sm:$0xff] %v596_v6  ;;  %613 = vst [vmem:[%s1200_s6 + $0x78] sm:$0xff] %v597_v18 }
 0x33b   : > { %868 = shalt.err (!%p865_p2)
}
 0x33c   : > { %s869_s28 = scalar_lea.hbm %s1231_s19, 2048  ;;  %s873_s10 = scalar_lea.hbm %s1284_s3, 4096 }
 0x33d   : > { %p870_p4 = scmp.ne.s32.totalorder %s1231_s19, %s869_s28  ;;  %p874_p9 = scmp.lt.u32.totalorder %s1231_s19, %s1284_s3 }
 0x33e   : > { %p875_p1 = scmp.lt.u32.totalorder %s873_s10, %s869_s28  ;;  %p877_p6 = scmp.lt.u32.totalorder %s869_s28, %s1231_s19 }
 0x33f   : > { %p871_p5 = pnand %p870_p4, %p1291_p11 }
 0x340   : > { %p876_p3 = por %p875_p1, %p874_p9 }
 0x341   : > { %p872_p7 = pneg %p871_p5 }
 0x342   : > { %p878_p12 = por %p877_p6, %p876_p3 }
 0x344   : > { %p879_p13 = pnand %p878_p12, %p872_p7 }
 0x346   : > { %882 = shalt.err (!%p879_p13)
}
 0x347   : > { %s930_s4 = smov 256   ;;  %s931_s6 = smov 16  }
 0x348   : > { %770 = dma.vmem_to_hbm [thread:$0]  (%p1291_p11), %s1233_s7, 2048, %s1231_s19, %s615_s16, %s930_s4, %s930_s4, %s931_s6  }
 0x349 PF: > { %s643_s9 = sand.u32 1, %s909_s12   ;;  %p1292_p8 = scmp.ne.s32.totalorder %s1289_s25, 0 }
 0x34a   : > { %p1293_p10 = scmp.ge.s32.totalorder %s921_s15, 2  ;;  %s644_s8 = scalar_lea.sflag [#allocation4], %s643_s9 }
 0x34c   : > { %p777_p0 = pnand %p1293_p10, %p1292_p8 }
 0x34e   : > { %904 = dma.done.wait (!%p777_p0), %s644_s8, 2048  }
 0x34f   : > { %906 = vsyncadd (!%p777_p0), %s644_s8, 4294965248  ;;  %p16_p2 = scmp.ge.s32.totalorder %s977_s18, 4   ;;  %s1294_s12 = smov %s913_s13 }
 0x350   : > { %s1295_s13 = smov %s917_s14  ;;  %s1296_s14 = smov %s989_s21 }
 0x351   : > { %s1297_s15 = smov %s977_s18  ;;  %18 = sbr.rel (!%p16_p2) target bundleno = 5 (0x5), region = 77 }
 0x358   :  { %649 = vsyncpa [#allocation3], 1 }
 0x359   :  { %651 = vsyncpa [#allocation3 + $0x1], 1 }
 0x35a   :  { %652 = vsyncpa [#allocation4], 1 }
 0x35b   :  { %654 = vsyncpa [#allocation4 + $0x1], 1 }

</bundles_post_ra>
